<compile_context>
chip_gen: v7x
topology: tpu7x:2x2x1
jax: 0.10.0
libtpu: 0.0.40
codegen_flags: <defaults>
</compile_context>

<pallas_src>
import jax
import jax.numpy as jnp
from jax.experimental import pallas as pl
from jax.experimental.pallas import tpu as pltpu


def _round_up(a: int, m: int) -> int:
    return ((a + m - 1) // m) * m


def _dnconv_matmul_kernel(a_ref, xs_ref, o_ref):
    # a_ref : (tr, V)  tile of the row-stacked supports A2 = reshape(A, (N*V, V))
    # xs_ref: (V, tl)  tile of the channel-summed input xs = x.sum(0)
    # o_ref : (tr, tl) output tile.  One MXU push per grid step, f32 accumulation.
    o_ref[...] = jnp.dot(
        a_ref[...], xs_ref[...], preferred_element_type=jnp.float32
    ).astype(o_ref.dtype)


def dnconv_pallas(x, support, *, row_tile=256, lane_tile=512,
                  operand_dtype=None, out_dtype=None):
    """dnconv for every support, fused as one stacked matmul.

    x: (C, V, L), support: (N, V, V) -> (N, V, L)
    Equals einsum('nvw,wl->nvl', support, x.sum(0)).

    Note: at tiny problem sizes (like the demo below) a plain jnp.einsum would
    beat kernel-dispatch overhead; the Pallas path is kept unconditional here so
    the kernel itself is exercised.
    """
    assert row_tile % 8 == 0 and lane_tile % 128 == 0
    C, V, L = x.shape
    N = support.shape[0]
    NV = N * V
    out_dtype = out_dtype or x.dtype

    # Hoisted channel reduction (done once, in f32, by XLA): kernel input is
    # (V, L) instead of (C, V, L).
    xs = jnp.sum(x.astype(jnp.float32), axis=0)

    # Stack supports row-wise: the whole op is one (N*V, V) @ (V, L) matmul.
    a2 = support.reshape(NV, V)

    if operand_dtype is not None:
        # bf16 operands for the MXU on v6e/v7x (f32 accumulation kept below).
        a2 = a2.astype(operand_dtype)
        xs = xs.astype(operand_dtype)

    # Tile sizes: rows in multiples of 8 (sublane), L in multiples of 128 (lane-
    # dense stores).  V (contraction dim) stays a full-extent block dim.
    tr = min(_round_up(NV, 8), row_tile)
    tl = min(_round_up(L, 128), lane_tile)
    NVp = _round_up(NV, tr)
    Lp = _round_up(L, tl)
    if NVp != NV:
        a2 = jnp.pad(a2, ((0, NVp - NV), (0, 0)))
    if Lp != L:
        xs = jnp.pad(xs, ((0, 0), (0, Lp - L)))

    grid = (NVp // tr, Lp // tl)

    # VMEM budget: double-buffered A2/xs/out tiles, with headroom (matters most
    # on v7x's 64 MiB physical VMEM).
    in_isz = jnp.dtype(a2.dtype).itemsize
    out_isz = jnp.dtype(out_dtype).itemsize
    footprint = 2 * ((tr * V + V * tl) * in_isz + tr * tl * out_isz)
    vmem_limit = int(min(max(4 * footprint, 16 * 1024 * 1024), 64 * 1024 * 1024))

    cost = pl.CostEstimate(
        flops=2 * NVp * V * Lp,
        transcendentals=0,
        bytes_accessed=(NVp * V + V * Lp) * in_isz + NVp * Lp * out_isz,
    )

    out = pl.pallas_call(
        _dnconv_matmul_kernel,
        out_shape=jax.ShapeDtypeStruct((NVp, Lp), out_dtype),
        grid_spec=pl.GridSpec(
            grid=grid,
            in_specs=[
                # Supports: re-DMA'd only when the row tile changes.
                pl.BlockSpec((tr, V), lambda i, j: (i, 0)),
                # Channel-summed input: small (V, tl) tile per lane tile.
                pl.BlockSpec((V, tl), lambda i, j: (0, j)),
            ],
            out_specs=pl.BlockSpec((tr, tl), lambda i, j: (i, j)),
        ),
        compiler_params=pltpu.CompilerParams(
            dimension_semantics=("parallel", "parallel"),
            vmem_limit_bytes=vmem_limit,
        ),
        cost_estimate=cost,
    )(a2, xs)

    return out[:NV, :L].reshape(N, V, L)


class GCNModulePallas:
    """Mirror of gcn_module(c_in, c_out, dropout, support_len=3, order=2).

    The PyTorch forward returns F.dropout(x1) where x1 = dnconv(x, support).
    The in-loop x2 = dnconv(x1, support) only feeds the unused `out` list and
    the 1x1 Conv2d `mlp` built in __init__ is never called in forward, so
    neither contributes to the returned value and neither is executed here.
    """

    def __init__(self, c_in, c_out, dropout, support_len=3, order=2):
        self.dropout = dropout
        self.order = order
        c_in_mlp = (order * support_len + 1) * c_in
        k1, _ = jax.random.split(jax.random.PRNGKey(42))
        # Parameters of the never-called mlp, kept only for structural parity.
        self.mlp_weight = jax.random.normal(k1, (c_out, c_in_mlp, 1, 1), jnp.float32) * 0.02
        self.mlp_bias = jnp.zeros((c_out,), jnp.float32)

    def __call__(self, x, support, **kwargs):
        x1 = dnconv_pallas(x, support, **kwargs)
        # TODO(synk): F.dropout with training=True is stochastic; this is the
        # deterministic eval/inference-mode path (identity), matching eval().
        h = x1
        return h


if __name__ == "__main__":
    key = jax.random.PRNGKey(0)
    kx, ka = jax.random.split(key)

    C, V, L = 4, 16, 256          # channels, nodes, time steps
    N = 3                         # number of supports (support_len)
    x = jax.random.normal(kx, (C, V, L), jnp.float32)
    support = jax.random.normal(ka, (N, V, V), jnp.float32)

    module = GCNModulePallas(c_in=C, c_out=8, dropout=0.3, support_len=N, order=2)

    # f32-operand run (matches PyTorch f32 numerics); small tiles so the demo
    # exercises a multi-step (3 row-tiles x 2 lane-tiles) pipelined grid.
    h = module(x, support, row_tile=16, lane_tile=128)
    h = jax.block_until_ready(h)

    ref = jnp.einsum('nvw,wl->nvl', support, jnp.sum(x, axis=0))
    assert h.shape == (N, V, L), h.shape
    assert jnp.allclose(h, ref, atol=1e-4, rtol=1e-4), \
        float(jnp.max(jnp.abs(h - ref)))

    # bf16-operand path (v6e/v7x MXU / half input DMA); f32 accumulation, so
    # only operand-rounding error vs the f32 reference.
    h_bf16 = module(x, support, row_tile=16, lane_tile=128,
                    operand_dtype=jnp.bfloat16)
    h_bf16 = jax.block_until_ready(h_bf16)
    assert h_bf16.shape == (N, V, L)
    assert jnp.allclose(h_bf16.astype(jnp.float32), ref, atol=2e-1, rtol=2e-1)

    print("KERNEL_OK")
</pallas_src>

<mosaic_0001>
module attributes {stable_mosaic.version = 11 : i64} {
  func.func @_dnconv_matmul_kernel(%arg0: i32, %arg1: i32, %arg2: memref<16x16xf32, #tpu.memory_space<vmem>>, %arg3: memref<16x128xf32, #tpu.memory_space<vmem>>, %arg4: memref<16x128xf32, #tpu.memory_space<vmem>>) attributes {dimension_semantics = [#tpu.dimension_semantics<parallel>, #tpu.dimension_semantics<parallel>], iteration_bounds = array<i64: 3, 2>, scalar_prefetch = 0 : i64, scratch_operands = 0 : i64, tpu.core_type = #tpu.core_type<tc>, window_params = [{transform_indices = @transform_0, window_bounds = array<i64: 16, 16>}, {transform_indices = @transform_1, window_bounds = array<i64: 16, 128>}, {transform_indices = @transform_2, window_bounds = array<i64: 16, 128>}]} {
    %c0 = arith.constant 0 : index
    %c0_0 = arith.constant 0 : index
    %0 = vector.load %arg2[%c0, %c0_0] : memref<16x16xf32, #tpu.memory_space<vmem>>, vector<16x16xf32>
    %c0_1 = arith.constant 0 : index
    %c0_2 = arith.constant 0 : index
    %1 = vector.load %arg3[%c0_1, %c0_2] : memref<16x128xf32, #tpu.memory_space<vmem>>, vector<16x128xf32>
    %cst = arith.constant dense<0.000000e+00> : vector<16x128xf32>
    %2 = tpu.matmul %0, %1, %cst {dimension_numbers = #tpu.dot_dimension_numbers<[1], [0], [0], [1], [0, 0, 1, 1], [], []>} : vector<16x16xf32>, vector<16x128xf32>, vector<16x128xf32> -> vector<16x128xf32>
    %c0_3 = arith.constant 0 : index
    %c0_4 = arith.constant 0 : index
    %3 = vector.load %arg4[%c0_3, %c0_4] : memref<16x128xf32, #tpu.memory_space<vmem>>, vector<16x128xf32>
    tpu.vector_store %arg4[%c0_3, %c0_4], %2 {strides = array<i32>} : memref<16x128xf32, #tpu.memory_space<vmem>>, vector<16x128xf32>,
    return
  }
  func.func @transform_0(%arg0: i32, %arg1: i32) -> (i32, i32) {
    %c0_i32 = arith.constant 0 : i32
    %c0_i32_0 = arith.constant 0 : i32
    return %arg0, %c0_i32 : i32, i32
  }
  func.func @transform_1(%arg0: i32, %arg1: i32) -> (i32, i32) {
    %c0_i32 = arith.constant 0 : i32
    %c0_i32_0 = arith.constant 0 : i32
    return %c0_i32, %arg1 : i32, i32
  }
  func.func @transform_2(%arg0: i32, %arg1: i32) -> (i32, i32) {
    %c0_i32 = arith.constant 0 : i32
    return %arg0, %arg1 : i32, i32
  }
}

</mosaic_0001>

<bundles_post_ra>
// kernel: tpu_custom_call.1
= control target key start
LH: loop header
LB: loop body
LE: loop exit
PB: predicated region body
PF: predicated region fallthrough
CT: control target
= control target key end

     0   :  { %7 = vsyncpa [#allocation4], 0  ;;  %s843_s0 = inlined_call_operand.vmem [shape: f32[48,16], index: 0, kind: input, shape index: {}]   ;;  %s844_s1 = inlined_call_operand.vmem [shape: f32[16,256], index: 1, kind: input, shape index: {}]   ;;  %s845_s2 = inlined_call_operand.hbm [shape: f32[48,256], index: 2, kind: output, shape index: {}]  }
   0x1   :  { %9 = vsyncpa [#allocation4 + $0x1], 0  ;;  %s670_s9 = smov 0   ;;  %s672_s10 = smov 0  }
   0x2   :  { %s674_s11 = smov 0   ;;  %s676_s12 = smov 0  }
   0x3   :  { %s678_s13 = smov 0   ;;  %s680_s14 = smov 0  }
   0x4   :  { %s682_s15 = smov 0   ;;  %s684_s16 = smov 0  }
   0x5   :  { %s686_s17 = smov 0   ;;  %s688_s18 = smov 0  }
   0x6 LB: > { %s414_s19 = sadd.s32 4294967295, %s649_s18   ;;  %s415_s20 = sadd.s32 4294967294, %s649_s18   ;;  %s649_s18 = sphi %s688_s18, %s15_s18   ;;  %s645_s17 = sphi %s686_s17, %s857_s17   ;;  %s641_s16 = sphi %s684_s16, %s856_s16   ;;  %s637_s15 = sphi %s682_s15, %s855_s15   ;;  %s633_s14 = sphi %s680_s14, %s854_s14   ;;  %s629_s13 = sphi %s678_s13, %s853_s13   ;;  %s625_s12 = sphi %s676_s12, %s852_s12   ;;  %s621_s11 = sphi %s674_s11, %s851_s11   ;;  %s617_s10 = sphi %s672_s10, %s850_s10   ;;  %s613_s9 = sphi %s670_s9, %s849_s9  }
   0x7   : > { %s24_s21 = sadd.s32 1, %s641_s16  ;;  %s27_s22 = sadd.s32 1, %s645_s17 }
   0x8   : > { %p25_p0 = scmp.ge.s32.totalorder %s24_s21, 2  ;;  %s60_s23 = sadd.s32 1, %s629_s13 }
   0x9   : > { %p67_p1 = scmp.ne.s32.totalorder %s629_s13, %s625_s12  ;;  %p68_p2 = scmp.eq.s32.totalorder %s649_s18, 0 }
   0xa   : > { %s859_s21 = smov (%p25_p0, %s24_s21), 0  ;;  %s861_s22 = smov (!%p25_p0, %s27_s22), %s645_s17 }
   0xb   : > { %s57_s24 = ssub.s32 %s641_s16, %s859_s21  ;;  %p733_p3 = por %p68_p2, %p67_p1 }
   0xc   : > { %p29_p4 = scmp.ge.s32.totalorder %s861_s22, 3  ;;  %p58_p5 = scmp.eq.s32.totalorder %s57_s24, 0 }
   0xd   : > { %s88_s26 = sadd.s32 1, %s621_s11  ;;  %p98_p6 = scmp.ne.s32.totalorder %s621_s11, %s617_s10 }
   0xe   : > { %s863_s22 = smov (%p29_p4, %s861_s22), 0  ;;  %p99_p7 = scmp.eq.s32.totalorder %s414_s19, 5 }
   0xf   : > { %s743_s27 = scalar_select %p58_p5, %s629_s13, %s60_s23  }
  0x10   : > { %s83_s28 = ssub.s32 %s645_s17, %s863_s22  ;;  %p104_p8 = scmp.ne.s32.totalorder %s617_s10, %s613_s9 }
  0x11   : > { %s85_s29 = sor.u32 %s83_s28, %s57_s24  ;;  %p749_p10 = por %p99_p7, %p98_p6 }
  0x12   : > { %p86_p9 = scmp.eq.s32.totalorder %s85_s29, 0  ;;  %p105_p11 = scmp.eq.s32.totalorder %s415_s20, 5 }
  0x13   : > { %p417_p13 = scmp.ge.s32.totalorder %s649_s18, 6 }
  0x14   : > { %s754_s3 = scalar_select %p86_p9, %s621_s11, %s88_s26  }
  0x15   : > { %p756_p12 = por %p105_p11, %p104_p8  ;;  %121 = sbr.rel (%p417_p13) target bundleno = 35 (0x23), region = 16 }
  0x1c   : > { %133 = sbr.rel (!%p733_p3) target bundleno = 35 (0x23), region = 24  ;;  %s135_s5 = sand.u32 (%p733_p3), 1, %s629_s13  }
  0x1d   : > { %s419_s6 = sshll.u32 (%p733_p3), %s641_s16, 3  ;;  %s418_s7 = sshll.u32 (%p733_p3), %s135_s5, 4 }
  0x1e   : > { %s139_s20 = scalar_lea.vmem (%p733_p3), %s844_s1, %s419_s6  ;;  %s137_s23 = scalar_lea.vmem (%p733_p3), [#allocation2], %s418_s7 }
  0x1f   : > { %v169_v0 = vld [vmem:[%s139_s20] sm:$0xff] (%p733_p3)  ;;  %v171_v1 = vld [vmem:[%s139_s20 + $0x10] sm:$0xff] (%p733_p3) }
  0x20   : > { %170 = vst [vmem:[%s137_s23] sm:$0xff] (%p733_p3), %v169_v0  ;;  %172 = vst [vmem:[%s137_s23 + $0x8] sm:$0xff] (%p733_p3), %v171_v1 }
  0x23 PF: > { %p420_p0 = scmp.ge.s32.totalorder %s649_s18, 1  ;;  %p177_p1 = scmp.lt.s32.totalorder %s649_s18, 7 }
  0x25   : > { %p178_p2 = pnand %p420_p0, %p177_p1 }
  0x26   : > { %s184_s24 = sand.u32 (!%p178_p2), 1, %s625_s12   ;;  %s423_s25 = sshll.u32 (!%p178_p2), %s637_s15, 1  ;;  %vm221_vm0 = vcmask (!%p178_p2), 130048  }
  0x27   : > { %181 = sbr.rel (%p178_p2) target bundleno = 280 (0x118), region = 62  ;;  %s421_s26 = sshll.u32 (!%p178_p2), %s184_s24, 4 }
  0x28   : > { %p211_p3 = scmp.lt.s32.totalorder (!%p178_p2), %s423_s25, 5  ;;  %s186_s28 = scalar_lea.vmem (!%p178_p2), [#allocation2], %s421_s26 }
  0x29   : > { %v219_v2 = vld [vmem:[%s186_s28] sm:$0xff] (!%p178_p2)  ;;  %v220_v3 = vld [vmem:[%s186_s28 + $0x8] sm:$0xff] (!%p178_p2)  ;;  %s207_s12 = sand.u32 (!%p178_p2), 1, %s617_s10   ;;  %s433_s19 = sshll.u32 (!%p178_p2), %s637_s15, 2 }
  0x2a   : > { %v445_v4 = vpack.c.bf16 (!%p178_p2), %v220_v3, %v219_v2  ;;  %s422_s8 = sshll.u32 (!%p178_p2), %s207_s12, 4  ;;  %s318_s20 = sadd.s32 (!%p178_p2), %s633_s14, %s433_s19 }
  0x2b   : > { %s209_s23 = scalar_lea.vmem (!%p178_p2), [#allocation3], %s422_s8  ;;  %s430_s26 = sshll.u32 (!%p178_p2), %s318_s20, 7 }
  0x2c   : > { %446 = vmatprep.subr.bf16.mxu0 (!%p178_p2), %v445_v4  ;;  %s321_s24 = sshll.u32 (!%p178_p2), %s209_s23, 4  ;;  %s785_s5 = scalar_lea.sflag (!%p178_p2), [#allocation4], %s207_s12  ;;  %s778_s24 = int_to_ptr.vmem [resolvable:$true] %s321_s24 }
  0x2d   : > { %448 = vmatpush3.bf16.msra.mxu0 (!%p178_p2), %v445_v4  ;;  %s539_s14 = scalar_lea.vmem (!%p178_p2), %s778_s24, 256  ;;  %s651_s15 = smov (!%p178_p2), [#allocation3]  }
  0x2e   : > { %s865_s25 = smov (!%p211_p3, %s423_s25), 5  ;;  %p540_p4 = scmp.ne.s32.totalorder %s778_s24, %s539_s14 }
  0x2f   : > { %s424_s29 = sshll.u32 %s865_s25, 3  ;;  %s543_s6 = sshll.u32 %s651_s15, 4  ;;  %s544_s6 = int_to_ptr.vmem [resolvable:$false] %s543_s6 }
  0x30   : > { %s214_s7 = scalar_lea.vmem %s843_s0, %s424_s29  ;;  %s783_s29 = scalar_lea.hbm %s845_s2, %s430_s26 }
  0x31   : > { %v217_v5 = vld [vmem:[%s214_s7] sm:$0xff]  ;;  %v218_v6 = vld [vmem:[%s214_s7 + $0x8] sm:$0xff]  ;;  %p541_p5 = pnand %p540_p4, %p749_p10  ;;  %s545_s7 = scalar_lea.vmem %s544_s6, 512 }
  0x32   : > { %442 = vmatprep.mubr.msk.f32.mxu0 %vm221_vm0, %v217_v5  ;;  %p546_p7 = scmp.lt.s32.totalorder %s778_s24, %s544_s6  ;;  %p547_p8 = scmp.lt.s32.totalorder %s545_s7, %s539_s14 }
  0x33   : > { %443 = vmatmul.mubr.msk.f32.vlgmr.msra.gmra.mrb[0].mxu0 %vm221_vm0, %v218_v6  ;;  %p542_p6 = pneg %p541_p5 }
  0x34   : > { %p548_p9 = por %p547_p8, %p546_p7 }
  0x36   : > { %p549_p11 = pnand %p548_p9, %p542_p6 }
 0x106   : > { %v444_v7 = vpop.f32.mrb[0].mxu0 }
 0x107   : > { %304 = vst [vmem:[%s209_s23 + $0x8] sm:$0xff] %v444_v7  ;;  %v294_v8 = vpop.f32.mrb[1].mxu0 }
 0x108   : > { %303 = vst [vmem:[%s209_s23] sm:$0xff] %v294_v8 }
 0x109   : > { %552 = shalt.err (!%p549_p11)
}
 0x10a   : > { %s553_s12 = scalar_lea.hbm %s783_s29, 256  ;;  %s557_s20 = scalar_lea.hbm %s845_s2, 1536 }
 0x10b   : > { %p554_p13 = scmp.ne.s32.totalorder %s783_s29, %s553_s12  ;;  %p558_p2 = scmp.lt.u32.totalorder %s783_s29, %s845_s2 }
 0x10c   : > { %p559_p3 = scmp.lt.u32.totalorder %s557_s20, %s553_s12  ;;  %p561_p5 = scmp.lt.u32.totalorder %s553_s12, %s783_s29 }
 0x10d   : > { %p555_p0 = pnand %p554_p13, %p749_p10 }
 0x10e   : > { %p560_p4 = por %p559_p3, %p558_p2 }
 0x10f   : > { %p556_p1 = pneg %p555_p0 }
 0x110   : > { %p562_p6 = por %p561_p5, %p560_p4 }
 0x112   : > { %p563_p7 = pnand %p562_p6, %p556_p1 }
 0x114   : > { %566 = shalt.err (!%p563_p7)
}
 0x115   : > { %s652_s25 = smov 128   ;;  %s653_s28 = smov 256  }
 0x116   : > { %s654_s14 = smov 8  }
 0x117   : > { %449 = dma.vmem_to_hbm [thread:$0]  (%p749_p10), %s778_s24, 256, %s783_s29, %s785_s5, %s652_s25, %s653_s28, %s654_s14  }
 0x118 PF: > { %p455_p8 = scmp.ge.s32.totalorder %s649_s18, 2  ;;  %s336_s15 = sand.u32 1, %s613_s9  }
 0x119   : > { %s337_s6 = scalar_lea.sflag [#allocation4], %s336_s15 }
 0x11a   : > { %p452_p9 = pnand %p455_p8, %p756_p12 }
 0x11c   : > { %608 = dma.done.wait (!%p452_p9), %s337_s6, 256  }
 0x11d   : > { %610 = vsyncadd (!%p452_p9), %s337_s6, 4294967040  ;;  %s15_s18 = sadd.s32 1, %s649_s18   ;;  %s849_s9 = smov %s617_s10 }
 0x11e   : > { %p12_p11 = scmp.ge.s32.totalorder %s15_s18, 8   ;;  %s850_s10 = smov %s621_s11 }
 0x11f   : > { %s851_s11 = smov %s754_s3  ;;  %s852_s12 = smov %s629_s13 }
 0x120   : > { %s853_s13 = smov %s743_s27  ;;  %s854_s14 = smov %s641_s16 }
 0x121   : > { %s855_s15 = smov %s645_s17  ;;  %s856_s16 = smov %s859_s21 }
 0x122   : > { %s857_s17 = smov %s863_s22  ;;  %14 = sbr.rel (!%p12_p11) target bundleno = 6 (0x6), region = 109 }
 0x129   :  { %342 = vsyncpa [#allocation4], 1 }
 0x12a   :  { %344 = vsyncpa [#allocation4 + $0x1], 1 }

</bundles_post_ra>
